<compile_context>
chip_gen: v7x
topology: tpu7x:2x2x1
jax: 0.10.0
libtpu: 0.0.40
codegen_flags: <defaults>
</compile_context>

<pallas_src>
import functools

import jax
import jax.numpy as jnp
from jax.experimental import pallas as pl
from jax.experimental.pallas import tpu as pltpu

LEAKY_SLOPE = 0.2
BN_EPS = 1e-5


def _leaky(x):
    return jnp.where(x > 0, x, LEAKY_SLOPE * x)


def _round_up(x, m):
    return (x + m - 1) // m * m


# ---------------------------------------------------------------------------
# Pass 1: conv1 (bias) -> LeakyReLU -> conv2 (no bias); emit per-tile centered
#         BatchNorm statistics (sum, centered sum-of-squares) per channel.
# ---------------------------------------------------------------------------
def _stats_kernel(x_ref, w1_ref, b1_ref, w2_ref, stats_ref, *,
                  dhw, tile_p, needs_mask, compute_dtype):
    x = x_ref[0].astype(compute_dtype)                                   # (Cin, TP)
    w1 = w1_ref[...].astype(compute_dtype)
    h1 = _leaky(jnp.dot(w1, x, preferred_element_type=jnp.float32)
                + b1_ref[...])                                           # (ndf, TP)
    h2 = jnp.dot(w2_ref[...].astype(compute_dtype), h1.astype(compute_dtype),
                 preferred_element_type=jnp.float32)                     # (c2, TP)

    if needs_mask:
        j = pl.program_id(1)
        valid = jnp.minimum(dhw - j * tile_p, tile_p)                    # int32 scalar
        lane = jax.lax.broadcasted_iota(jnp.int32, h2.shape, 1)
        mask = lane < valid
        s = jnp.sum(jnp.where(mask, h2, 0.0), axis=1, keepdims=True)     # (c2, 1)
        mu = s / valid.astype(jnp.float32)
        d = jnp.where(mask, h2 - mu, 0.0)
    else:
        s = jnp.sum(h2, axis=1, keepdims=True)                           # (c2, 1)
        mu = s * (1.0 / tile_p)
        d = h2 - mu
    m2 = jnp.sum(d * d, axis=1, keepdims=True)                           # (c2, 1)

    stats_ref[0, 0, :, 0:1] = s
    stats_ref[0, 0, :, 1:2] = m2


# ---------------------------------------------------------------------------
# Pass 2: recompute conv1 / conv2 (BN scale pre-folded into w2), add BN shift,
#         LeakyReLU, conv3.  Output is lane-dense (1, TP).
# ---------------------------------------------------------------------------
def _fwd_kernel(x_ref, w1_ref, b1_ref, w2s_ref, shift_ref, w3_ref, out_ref, *,
                compute_dtype):
    x = x_ref[0].astype(compute_dtype)                                   # (Cin, TP)
    w1 = w1_ref[...].astype(compute_dtype)
    h1 = _leaky(jnp.dot(w1, x, preferred_element_type=jnp.float32)
                + b1_ref[...])                                           # (ndf, TP)
    h2 = jnp.dot(w2s_ref[...].astype(compute_dtype), h1.astype(compute_dtype),
                 preferred_element_type=jnp.float32)                     # (c2, TP)
    y = _leaky(h2 + shift_ref[...])                                      # (c2, TP)
    out_ref[0] = jnp.dot(w3_ref[...].astype(compute_dtype), y.astype(compute_dtype),
                         preferred_element_type=jnp.float32)             # (1, TP)


def pixel_discriminator(x_ncdhw, params, *, tile_p=None,
                        compute_dtype=jnp.float32,
                        vmem_limit_bytes=48 * 1024 * 1024):
    """Forward pass of PixelDiscriminator. x_ncdhw: (N, 2, D, H, W) float32."""
    w1, b1, w2, gamma, beta, w3 = (
        params["w1"], params["b1"], params["w2"],
        params["gamma"], params["beta"], params["w3"],
    )
    N, Cin, D, H, W = x_ncdhw.shape
    ndf = w1.shape[0]
    c2 = w2.shape[0]
    DHW = D * H * W

    # ---- tile sizing: biggest lane-dense tile that fits a VMEM budget -------
    if tile_p is None:
        cin_p = max(_round_up(Cin, 8), 8)
        ndf_p = _round_up(ndf, 8)
        c2_p = _round_up(c2, 8)
        # rough f32 bytes/lane: x double-buffer (sublane padded) + out
        # double-buffer + h1 + h2 + y (+ temporaries slack)
        bytes_per_lane = 4 * (2 * cin_p + 2 * 8 + ndf_p + 3 * c2_p)
        budget = 40 * 1024 * 1024            # headroom under vmem_limit_bytes
        tile_p = max((budget // bytes_per_lane) // 128 * 128, 128)
        tile_p = min(tile_p, 128 * 1024)
    tile_p = max(128, (tile_p // 128) * 128)
    tile_p = min(tile_p, _round_up(DHW, 128))

    DHW_pad = _round_up(DHW, tile_p)
    n_tiles = DHW_pad // tile_p
    needs_mask = DHW_pad != DHW

    # Native layout: (N, Cin, D, H, W) -> (N, Cin, DHW) is a free view.
    x3 = x_ncdhw.reshape(N, Cin, DHW).astype(jnp.float32)
    if needs_mask:
        # TODO(synk): padding unaligned D*H*W costs one extra copy of x; the
        # aligned path (D*H*W multiple of 128/tile) is copy-free.
        x3 = jnp.pad(x3, ((0, 0), (0, 0), (0, DHW_pad - DHW)))

    w1m = w1.astype(jnp.float32)                        # (ndf, Cin)
    b1m = b1.reshape(ndf, 1).astype(jnp.float32)        # (ndf, 1) broadcast on lanes
    w2m = w2.astype(jnp.float32)                        # (c2, ndf)
    w3m = w3.astype(jnp.float32)                        # (1, c2)

    grid = (N, n_tiles)
    x_spec = pl.BlockSpec((1, Cin, tile_p), lambda n, j: (n, 0, j))
    w1_spec = pl.BlockSpec((ndf, Cin), lambda n, j: (0, 0))
    b1_spec = pl.BlockSpec((ndf, 1), lambda n, j: (0, 0))
    w2_spec = pl.BlockSpec((c2, ndf), lambda n, j: (0, 0))
    cparams = pltpu.CompilerParams(
        dimension_semantics=("parallel", "parallel"),
        vmem_limit_bytes=vmem_limit_bytes,
    )

    # ---- pass 1: per-tile BatchNorm statistics (fully parallel grid) --------
    stats_kernel = functools.partial(
        _stats_kernel, dhw=DHW, tile_p=tile_p,
        needs_mask=needs_mask, compute_dtype=compute_dtype)
    stats = pl.pallas_call(
        stats_kernel,
        out_shape=jax.ShapeDtypeStruct((N, n_tiles, c2, 2), jnp.float32),
        grid_spec=pltpu.PrefetchScalarGridSpec(
            num_scalar_prefetch=0,
            grid=grid,
            in_specs=[x_spec, w1_spec, b1_spec, w2_spec],
            out_specs=pl.BlockSpec((1, 1, c2, 2), lambda n, j: (n, j, 0, 0)),
        ),
        compiler_params=cparams,
    )(x3, w1m, b1m, w2m)

    # BatchNorm3d (training mode): batch statistics, biased variance.
    # Numerically stable merge of per-tile centered partial stats with
    # per-tile valid-pixel counts (padded lanes excluded).
    counts = jnp.minimum(DHW - jnp.arange(n_tiles) * tile_p, tile_p).astype(jnp.float32)
    tile_sum = stats[..., 0]                                    # (N, n_tiles, c2)
    tile_m2 = stats[..., 1]                                     # (N, n_tiles, c2)
    p_total = float(N * DHW)
    mean = jnp.sum(tile_sum, axis=(0, 1)) / p_total             # (c2,)
    tile_mean = tile_sum / counts[None, :, None]
    m2 = (jnp.sum(tile_m2, axis=(0, 1))
          + jnp.sum(counts[None, :, None] * (tile_mean - mean) ** 2, axis=(0, 1)))
    var = m2 / p_total
    inv_std = jax.lax.rsqrt(var + BN_EPS)
    scale = gamma * inv_std                                     # (c2,)
    shift = (beta - mean * scale).reshape(c2, 1).astype(jnp.float32)
    w2_scaled = (scale[:, None] * w2m).astype(jnp.float32)      # BN scale folded into conv2

    # ---- pass 2: recompute + BN shift + LeakyReLU + conv3 (lane-dense out) --
    fwd_kernel = functools.partial(_fwd_kernel, compute_dtype=compute_dtype)
    out = pl.pallas_call(
        fwd_kernel,
        out_shape=jax.ShapeDtypeStruct((N, 1, DHW_pad), jnp.float32),
        grid_spec=pltpu.PrefetchScalarGridSpec(
            num_scalar_prefetch=0,
            grid=grid,
            in_specs=[
                x_spec, w1_spec, b1_spec, w2_spec,
                pl.BlockSpec((c2, 1), lambda n, j: (0, 0)),
                pl.BlockSpec((1, c2), lambda n, j: (0, 0)),
            ],
            out_specs=pl.BlockSpec((1, 1, tile_p), lambda n, j: (n, 0, j)),
        ),
        compiler_params=cparams,
    )(x3, w1m, b1m, w2_scaled, shift, w3m)

    if needs_mask:
        out = out[:, :, :DHW]
    return out.reshape(N, 1, D, H, W)


def reference_forward(x_ncdhw, params):
    """Pure-JAX reference (same math) for a correctness check."""
    w1, b1, w2, gamma, beta, w3 = (
        params["w1"], params["b1"], params["w2"],
        params["gamma"], params["beta"], params["w3"],
    )
    N, Cin, D, H, W = x_ncdhw.shape
    x = jnp.transpose(x_ncdhw, (0, 2, 3, 4, 1)).reshape(-1, Cin)
    h1 = _leaky(x @ w1.T + b1)
    h2 = h1 @ w2.T
    mean = jnp.mean(h2, axis=0)
    var = jnp.mean((h2 - mean) ** 2, axis=0)
    y = (h2 - mean) * jax.lax.rsqrt(var + BN_EPS) * gamma + beta
    y = _leaky(y)
    out = y @ w3.T
    return jnp.transpose(out.reshape(N, D, H, W, 1), (0, 4, 1, 2, 3))


def init_params(key, ndf):
    input_nc = 2
    c2 = 2 * ndf
    k1, k2, k3, k4 = jax.random.split(key, 4)
    return {
        "w1": 0.1 * jax.random.normal(k1, (ndf, input_nc), jnp.float32),
        "b1": 0.1 * jax.random.normal(k2, (ndf,), jnp.float32),
        "w2": 0.1 * jax.random.normal(k3, (c2, ndf), jnp.float32),   # bias=False (BatchNorm3d)
        "gamma": jnp.ones((c2,), jnp.float32),                       # BN default init
        "beta": jnp.zeros((c2,), jnp.float32),
        "w3": 0.1 * jax.random.normal(k4, (1, c2), jnp.float32),     # bias=False
    }


if __name__ == "__main__":
    key = jax.random.PRNGKey(0)
    kx, kp, kx2 = jax.random.split(key, 3)

    # Case 1: 128-aligned spatial extent (copy-free fast path).
    N, C, D, H, W = 2, 2, 4, 16, 32
    x = jax.random.normal(kx, (N, C, D, H, W), jnp.float32)
    ndf = 8
    params = init_params(kp, ndf)

    out = jax.block_until_ready(pixel_discriminator(x, params))
    ref = reference_forward(x, params)
    assert out.shape == (N, 1, D, H, W), out.shape
    assert jnp.allclose(out, ref, atol=1e-4, rtol=1e-4), "mismatch vs reference (aligned)"

    # Case 2: unaligned spatial extent exercises the pad + lane-mask path.
    x2 = jax.random.normal(kx2, (1, C, 3, 5, 7), jnp.float32)
    out2 = jax.block_until_ready(pixel_discriminator(x2, params))
    ref2 = reference_forward(x2, params)
    assert out2.shape == (1, 1, 3, 5, 7), out2.shape
    assert jnp.allclose(out2, ref2, atol=1e-4, rtol=1e-4), "mismatch vs reference (padded)"

    print("KERNEL_OK")
</pallas_src>

<mosaic_0001>
module attributes {stable_mosaic.version = 11 : i64} {
  func.func @_stats_kernel(%arg0: i32, %arg1: i32, %arg2: memref<1x2x2048xf32, #tpu.memory_space<vmem>>, %arg3: memref<8x2xf32, #tpu.memory_space<vmem>>, %arg4: memref<8x1xf32, #tpu.memory_space<vmem>>, %arg5: memref<16x8xf32, #tpu.memory_space<vmem>>, %arg6: memref<1x1x16x2xf32, #tpu.memory_space<vmem>>) attributes {dimension_semantics = [#tpu.dimension_semantics<parallel>, #tpu.dimension_semantics<parallel>], iteration_bounds = array<i64: 2, 1>, scalar_prefetch = 0 : i64, scratch_operands = 0 : i64, tpu.core_type = #tpu.core_type<tc>, window_params = [{transform_indices = @transform_0, window_bounds = array<i64: 1, 2, 2048>}, {pipeline_mode = #tpu.pipeline_mode<synchronous>, transform_indices = @transform_1, window_bounds = array<i64: 8, 2>}, {pipeline_mode = #tpu.pipeline_mode<synchronous>, transform_indices = @transform_2, window_bounds = array<i64: 8, 1>}, {pipeline_mode = #tpu.pipeline_mode<synchronous>, transform_indices = @transform_3, window_bounds = array<i64: 16, 8>}, {transform_indices = @transform_4, window_bounds = array<i64: 1, 1, 16, 2>}]} {
    %c0 = arith.constant 0 : index
    %c0_0 = arith.constant 0 : index
    %c0_1 = arith.constant 0 : index
    %0 = vector.load %arg2[%c0, %c0_0, %c0_1] : memref<1x2x2048xf32, #tpu.memory_space<vmem>>, vector<1x2x2048xf32>
    %1 = vector.shape_cast %0 : vector<1x2x2048xf32> to vector<2x2048xf32>
    %c0_2 = arith.constant 0 : index
    %c0_3 = arith.constant 0 : index
    %2 = vector.load %arg3[%c0_2, %c0_3] : memref<8x2xf32, #tpu.memory_space<vmem>>, vector<8x2xf32>
    %cst = arith.constant dense<0.000000e+00> : vector<8x2048xf32>
    %3 = tpu.matmul %2, %1, %cst {dimension_numbers = #tpu.dot_dimension_numbers<[1], [0], [0], [1], [0, 0, 1, 1], [], []>} : vector<8x2xf32>, vector<2x2048xf32>, vector<8x2048xf32> -> vector<8x2048xf32>
    %c0_4 = arith.constant 0 : index
    %c0_5 = arith.constant 0 : index
    %4 = vector.load %arg4[%c0_4, %c0_5] : memref<8x1xf32, #tpu.memory_space<vmem>>, vector<8x1xf32>
    %5 = vector.broadcast %4 : vector<8x1xf32> to vector<8x2048xf32>
    %6 = arith.addf %3, %5 : vector<8x2048xf32>
    %cst_6 = arith.constant 0.000000e+00 : f32
    %7 = vector.broadcast %cst_6 : f32 to vector<8x2048xf32>
    %8 = arith.cmpf ogt, %6, %7 : vector<8x2048xf32>
    %cst_7 = arith.constant 2.000000e-01 : f32
    %9 = vector.broadcast %cst_7 : f32 to vector<8x2048xf32>
    %10 = arith.mulf %9, %6 : vector<8x2048xf32>
    %11 = arith.select %8, %6, %10 : vector<8x2048xi1>, vector<8x2048xf32>
    %c0_8 = arith.constant 0 : index
    %c0_9 = arith.constant 0 : index
    %12 = vector.load %arg5[%c0_8, %c0_9] : memref<16x8xf32, #tpu.memory_space<vmem>>, vector<16x8xf32>
    %cst_10 = arith.constant dense<0.000000e+00> : vector<16x2048xf32>
    %13 = tpu.matmul %12, %11, %cst_10 {dimension_numbers = #tpu.dot_dimension_numbers<[1], [0], [0], [1], [0, 0, 1, 1], [], []>} : vector<16x8xf32>, vector<8x2048xf32>, vector<16x2048xf32> -> vector<16x2048xf32>
    %cst_11 = arith.constant dense<0.000000e+00> : vector<16xf32>
    %14 = vector.multi_reduction <add>, %13, %cst_11 [1] : vector<16x2048xf32> to vector<16xf32>
    %15 = vector.shape_cast %14 : vector<16xf32> to vector<16x1xf32>
    %cst_12 = arith.constant 4.8828125E-4 : f32
    %16 = vector.broadcast %cst_12 : f32 to vector<16x1xf32>
    %17 = arith.mulf %15, %16 : vector<16x1xf32>
    %18 = vector.broadcast %17 : vector<16x1xf32> to vector<16x2048xf32>
    %19 = arith.subf %13, %18 : vector<16x2048xf32>
    %20 = arith.mulf %19, %19 : vector<16x2048xf32>
    %cst_13 = arith.constant dense<0.000000e+00> : vector<16xf32>
    %21 = vector.multi_reduction <add>, %20, %cst_13 [1] : vector<16x2048xf32> to vector<16xf32>
    %22 = vector.shape_cast %21 : vector<16xf32> to vector<16x1xf32>
    %c0_14 = arith.constant 0 : index
    %c0_15 = arith.constant 0 : index
    %c0_16 = arith.constant 0 : index
    %c0_17 = arith.constant 0 : index
    %23 = vector.load %arg6[%c0_14, %c0_15, %c0_16, %c0_17] : memref<1x1x16x2xf32, #tpu.memory_space<vmem>>, vector<1x1x16x1xf32>
    %24 = vector.shape_cast %23 : vector<1x1x16x1xf32> to vector<16x1xf32>
    %25 = vector.shape_cast %15 : vector<16x1xf32> to vector<1x1x16x1xf32>
    tpu.vector_store %arg6[%c0_14, %c0_15, %c0_16, %c0_17], %25 {strides = array<i32>} : memref<1x1x16x2xf32, #tpu.memory_space<vmem>>, vector<1x1x16x1xf32>,
    %c0_18 = arith.constant 0 : index
    %c0_19 = arith.constant 0 : index
    %c0_20 = arith.constant 0 : index
    %c1 = arith.constant 1 : index
    %26 = vector.load %arg6[%c0_18, %c0_19, %c0_20, %c1] : memref<1x1x16x2xf32, #tpu.memory_space<vmem>>, vector<1x1x16x1xf32>
    %27 = vector.shape_cast %26 : vector<1x1x16x1xf32> to vector<16x1xf32>
    %28 = vector.shape_cast %22 : vector<16x1xf32> to vector<1x1x16x1xf32>
    tpu.vector_store %arg6[%c0_18, %c0_19, %c0_20, %c1], %28 {strides = array<i32>} : memref<1x1x16x2xf32, #tpu.memory_space<vmem>>, vector<1x1x16x1xf32>,
    return
  }
  func.func @transform_0(%arg0: i32, %arg1: i32) -> (i32, i32, i32) {
    %c0_i32 = arith.constant 0 : i32
    %c0_i32_0 = arith.constant 0 : i32
    return %arg0, %c0_i32, %arg1 : i32, i32, i32
  }
  func.func @transform_1(%arg0: i32, %arg1: i32) -> (i32, i32) {
    %c0_i32 = arith.constant 0 : i32
    %c0_i32_0 = arith.constant 0 : i32
    %c0_i32_1 = arith.constant 0 : i32
    return %c0_i32, %c0_i32_0 : i32, i32
  }
  func.func @transform_2(%arg0: i32, %arg1: i32) -> (i32, i32) {
    %c0_i32 = arith.constant 0 : i32
    %c0_i32_0 = arith.constant 0 : i32
    %c0_i32_1 = arith.constant 0 : i32
    return %c0_i32, %c0_i32_0 : i32, i32
  }
  func.func @transform_3(%arg0: i32, %arg1: i32) -> (i32, i32) {
    %c0_i32 = arith.constant 0 : i32
    %c0_i32_0 = arith.constant 0 : i32
    %c0_i32_1 = arith.constant 0 : i32
    return %c0_i32, %c0_i32_0 : i32, i32
  }
  func.func @transform_4(%arg0: i32, %arg1: i32) -> (i32, i32, i32, i32) {
    %c0_i32 = arith.constant 0 : i32
    %c0_i32_0 = arith.constant 0 : i32
    %c0_i32_1 = arith.constant 0 : i32
    return %arg0, %arg1, %c0_i32, %c0_i32_0 : i32, i32, i32, i32
  }
}

</mosaic_0001>

<bundles_post_ra>
// kernel: tpu_custom_call.1
= control target key start
LH: loop header
LB: loop body
LE: loop exit
PB: predicated region body
PF: predicated region fallthrough
CT: control target
= control target key end

     0   :  { %9 = vsyncpa [#allocation3], 0  ;;  %s2486_s0 = inlined_call_operand.hbm [shape: f32[2,2,2048], index: 0, kind: input, shape index: {}]   ;;  %s2487_s1 = inlined_call_operand.vmem [shape: f32[8,2], index: 1, kind: input, shape index: {}]   ;;  %s2488_s2 = inlined_call_operand.vmem [shape: f32[8,1], index: 2, kind: input, shape index: {}]   ;;  %s2489_s3 = inlined_call_operand.vmem [shape: f32[16,8], index: 3, kind: input, shape index: {}]   ;;  %s2490_s4 = inlined_call_operand.vmem [shape: f32[2,1,16,2], index: 4, kind: output, shape index: {}]  }
   0x1   :  { %11 = vsyncpa [#allocation3 + $0x1], 0  ;;  %s2071_s15 = smov 0   ;;  %s2073_s16 = smov 0  }
   0x2   :  { %s2075_s17 = smov 0   ;;  %s2077_s18 = smov 0  }
   0x3   :  { %s2079_s19 = smov 0   ;;  %s2081_s20 = smov 0  }
   0x4 LB: > { %s1842_s21 = sadd.s32 4294967295, %s2040_s20   ;;  %s29_s22 = sadd.s32 1, %s2036_s19  ;;  %s2040_s20 = sphi %s2081_s20, %s17_s20   ;;  %s2036_s19 = sphi %s2079_s19, %s2500_s19   ;;  %s2032_s18 = sphi %s2077_s18, %s2499_s18   ;;  %s2028_s17 = sphi %s2075_s17, %s2498_s17   ;;  %s2024_s16 = sphi %s2073_s16, %s2497_s16   ;;  %s2020_s15 = sphi %s2071_s15, %s2496_s15  }
   0x5   : > { %p31_p0 = scmp.ge.s32.totalorder %s29_s22, 2  ;;  %s38_s23 = sadd.s32 1, %s2028_s17 }
   0x6   : > { %p45_p1 = scmp.ne.s32.totalorder %s2028_s17, %s2024_s16  ;;  %p46_p2 = scmp.eq.s32.totalorder %s2040_s20, 0 }
   0x7   : > { %s2502_s22 = smov (%p31_p0, %s29_s22), 0  ;;  %p51_p4 = scmp.ne.s32.totalorder %s2024_s16, %s2020_s15 }
   0x8   : > { %p2107_p3 = por %p46_p2, %p45_p1  ;;  %s33_s25 = ssub.s32 %s2036_s19, %s2502_s22 }
   0x9   : > { %p52_p5 = scmp.eq.s32.totalorder %s1842_s21, 0  ;;  %p36_p6 = scmp.eq.s32.totalorder %s33_s25, 0 }
   0xa   : > { %p1903_p8 = scmp.lt.s32.totalorder %s2040_s20, 2  ;;  %s175_s28 = sand.u32 1, %s2028_s17  }
   0xb   : > { %p2114_p7 = por %p52_p5, %p51_p4  ;;  %s1895_s29 = sshll.u32 %s2036_s19, 9 }
   0xc   : > { %s2120_s27 = scalar_select %p36_p6, %s2028_s17, %s38_s23  }
   0xd   : > { %s1846_s30 = sshll.u32 %s175_s28, 5  ;;  %s2127_s7 = scalar_lea.hbm %s2486_s0, %s1895_s29 }
   0xe   : > { %s179_s8 = scalar_lea.vmem [#allocation2], %s1846_s30  ;;  %p2131_p9 = pnand %p1903_p8, %p2107_p3 }
   0xf   : > { %s189_s9 = sshll.u32 %s179_s8, 4  ;;  %s176_s11 = scalar_lea.sflag [#allocation3], %s175_s28  ;;  %s2135_s9 = int_to_ptr.vmem [resolvable:$true] %s189_s9 }
  0x10   : > { %s1960_s12 = scalar_lea.hbm %s2127_s7, 512  ;;  %p1962_p13 = pneg %p2131_p9 }
  0x11   : > { %p1961_p12 = scmp.ne.s32.totalorder %s2127_s7, %s1960_s12  ;;  %s1965_s15 = scalar_lea.hbm %s2486_s0, 1024 }
  0x12   : > { %p1966_p2 = scmp.lt.u32.totalorder %s2127_s7, %s2486_s0  ;;  %p1967_p3 = scmp.lt.u32.totalorder %s1965_s15, %s1960_s12 }
  0x13   : > { %p1963_p0 = pnand %p1962_p13, %p1961_p12  ;;  %p1969_p5 = scmp.lt.u32.totalorder %s1960_s12, %s2127_s7 }
  0x14   : > { %p1968_p4 = por %p1967_p3, %p1966_p2 }
  0x15   : > { %p1964_p1 = pneg %p1963_p0 }
  0x16   : > { %p1970_p6 = por %p1969_p5, %p1968_p4 }
  0x18   : > { %p1971_p8 = pnand %p1970_p6, %p1964_p1 }
  0x1a   : > { %1974 = shalt.err (!%p1971_p8)
}
  0x1b   : > { %s1975_s24 = scalar_lea.vmem %s2135_s9, 512  ;;  %s2042_s25 = smov [#allocation2]  }
  0x1c   : > { %p1976_p12 = scmp.ne.s32.totalorder %s2135_s9, %s1975_s24  ;;  %s1980_s28 = sshll.u32 %s2042_s25, 4  ;;  %s1981_s28 = int_to_ptr.vmem [resolvable:$false] %s1980_s28 }
  0x1d   : > { %s1982_s29 = scalar_lea.vmem %s1981_s28, 1024  ;;  %p1983_p11 = scmp.lt.s32.totalorder %s2135_s9, %s1981_s28 }
  0x1e   : > { %p1978_p0 = pnand %p1976_p12, %p1962_p13  ;;  %p1984_p2 = scmp.lt.s32.totalorder %s1982_s29, %s1975_s24 }
  0x20   : > { %p1979_p10 = pneg %p1978_p0  ;;  %p1985_p3 = por %p1984_p2, %p1983_p11 }
  0x22   : > { %p1986_p4 = pnand %p1985_p3, %p1979_p10 }
  0x24   : > { %1989 = shalt.err (!%p1986_p4)
}
  0x25   : > { %1902 = dma.hbm_to_vmem [thread:$0]  (!%p2131_p9), %s2127_s7, 512, %s2135_s9, %s176_s11  }
  0x26   : > { %p2494_p1 = scmp.lt.s32.totalorder %s2040_s20, 3  ;;  %p2495_p5 = scmp.ge.s32.totalorder %s2040_s20, 1 }
  0x28   : > { %p195_p13 = pnand %p2495_p5, %p2494_p1 }
  0x29   : > { %s200_s30 = sand.u32 (!%p195_p13), 1, %s2024_s16  }
  0x2a   : > { %198 = sbr.rel (%p195_p13) target bundleno = 852 (0x354), region = 36  ;;  %s1850_s5 = sshll.u32 (!%p195_p13), %s200_s30, 5 }
  0x2b   : > { %s201_s6 = scalar_lea.sflag (!%p195_p13), [#allocation3], %s200_s30  ;;  %s204_s8 = scalar_lea.vmem (!%p195_p13), [#allocation2], %s1850_s5 }
  0x31   : > { %2015 = dma.done.wait (%p2114_p7), %s201_s6, 512  }
  0x32   : > { %2017 = vsyncadd (%p2114_p7), %s201_s6, 4294966784  ;;  %v262_v0 = vlaneseq  ;;  %v2043_v1 = vmov 1983009808   ;;  %v2044_v3 = vmov 0.0   ;;  %v2045_v5 = vmov 0   ;;  %v243_v8 = vld [vmem:[%s204_s8] sm:$0xff] }
  0x33   : > { %v260_v2 = vunpack.c.l.s4 %v2043_v1  ;;  %427 = vmatprep.mubr.f32.mxu0 %v2044_v3  ;;  %498 = vmatprep.mubr.f32.mxu1 %v2044_v3  ;;  %v244_v9 = vld [vmem:[%s204_s8 + $0x8] sm:$0xff]  ;;  %v258_v11 = vcombine.high %v243_v8, %v243_v8  ;;  %v245_v14 = vld [vmem:[%s204_s8 + $0x10] sm:$0xff]  ;;  %v248_v15 = vld [vmem:[%s2488_s2] sm:$0xff]  ;;  %vm330_vm0 = vcmask 1041408   ;;  %vm326_vm1 = vcmask 15360   ;;  %p234_p7 = scmp.lt.s32.totalorder %s2032_s18, 1 }
  0x34   : > { %v263_v4 = vshrl.u32 %v262_v0, 7  ;;  %1955 = vset.pattern.permute.xlu0 %v2045_v5  ;;  %v275_v13 = vcombine.high %v244_v9, %v244_v9  ;;  %v292_v16 = vcombine.high %v245_v14, %v245_v14  ;;  %v246_v20 = vld [vmem:[%s204_s8 + $0x18] sm:$0xff]  ;;  %v247_v21 = vld [vmem:[%s2487_s1] sm:$0xff]  ;;  %vm981_vm5 = vcmask 64512  }
  0x35   : > { %v261_v6 = vunpack.c.0.s8 %v260_v2  ;;  %251 = vperm.xlu0 %1955, %v248_v15   ;;  %v309_v27 = vcombine.high %v246_v20, %v246_v20  ;;  %v2224_v53 = vld [vmem:[%s2489_s3] sm:$0xff]  ;;  %s2504_s18 = smov (!%p234_p7, %s2032_s18), 1 }
  0x36   : > { %s1896_s15 = sshll.u32 %s2504_s18, 4 }
  0x37   : > { %v264_v7 = vsub.s32 %v261_v6, %v263_v4  ;;  %s2394_s24 = scalar_lea.vmem %s2490_s4, %s1896_s15 }
  0x39   : > { %v265_v10 = vrot.slane %v243_v8, %v264_v7  ;;  %v282_v12 = vrot.slane %v244_v9, %v264_v7  ;;  %v272_v18 = vrot.slane %v258_v11, %v264_v7  ;;  %v289_v19 = vrot.slane %v275_v13, %v264_v7 }
  0x3a   : > { %v299_v23 = vrot.slane %v245_v14, %v264_v7  ;;  %v306_v26 = vrot.slane %v292_v16, %v264_v7  ;;  %v316_v29 = vrot.slane %v246_v20, %v264_v7  ;;  %v323_v31 = vrot.slane %v309_v27, %v264_v7  ;;  %v2238_v7 = vld [vmem:[%s2489_s3 + $0x8] sm:$0xff] }
  0x3b   : > { %v273_v17 = vcombine.high %v265_v10, %v265_v10  ;;  %v290_v22 = vcombine.high %v282_v12, %v282_v12  ;;  %v274_v24 = vcombine.high %v272_v18, %v272_v18  ;;  %v291_v25 = vcombine.high %v289_v19, %v289_v19 }
  0x3c   : > { %v307_v28 = vcombine.high %v299_v23, %v299_v23  ;;  %v308_v30 = vcombine.high %v306_v26, %v306_v26  ;;  %v324_v32 = vcombine.high %v316_v29, %v316_v29  ;;  %v325_v33 = vcombine.high %v323_v31, %v323_v31 }
  0x3d   : > { %1853 = vmatprep.subr.msk.mxu0 %vm330_vm0, %v273_v17  ;;  %1856 = vmatprep.subr.msk.mxu1 %vm330_vm0, %v274_v24 }
  0x3e   : > { %1854 = vmatpush1.msk.msra.mxu0 %vm330_vm0, %v265_v10  ;;  %1857 = vmatpush1.msk.msra.mxu1 %vm330_vm0, %v272_v18 }
  0x3f   : > { %1855 = vmatmul.mubr.msk.f32.vlgmr.msra.gmra.mrb[0].mxu0 %vm326_vm1, %v247_v21  ;;  %1859 = vmatprep.subr.msk.mxu0 %vm330_vm0, %v290_v22 }
  0x40   : > { %1858 = vmatmul.mubr.msk.f32.vlgmr.msra.gmra.mrb[0].mxu1 %vm326_vm1, %v247_v21  ;;  %1860 = vmatpush1.msk.msra.mxu0 %vm330_vm0, %v282_v12 }
  0x41   : > { %569 = vmatprep.mubr.f32.mxu0 %v2044_v3  ;;  %1862 = vmatprep.subr.msk.mxu1 %vm330_vm0, %v291_v25 }
  0x42   : > { %1863 = vmatpush1.msk.msra.mxu1 %vm330_vm0, %v289_v19  ;;  %640 = vmatprep.mubr.f32.mxu1 %v2044_v3 }
  0x43   : > { %1861 = vmatmul.mubr.msk.f32.vlgmr.msra.gmra.mrb[2].mxu0 %vm326_vm1, %v247_v21  ;;  %1865 = vmatprep.subr.msk.mxu0 %vm330_vm0, %v307_v28 }
  0x44   : > { %1864 = vmatmul.mubr.msk.f32.vlgmr.msra.gmra.mrb[2].mxu1 %vm326_vm1, %v247_v21  ;;  %1866 = vmatpush1.msk.msra.mxu0 %vm330_vm0, %v299_v23 }
  0x45   : > { %711 = vmatprep.mubr.f32.mxu0 %v2044_v3  ;;  %1868 = vmatprep.subr.msk.mxu1 %vm330_vm0, %v308_v30 }
  0x46   : > { %1869 = vmatpush1.msk.msra.mxu1 %vm330_vm0, %v306_v26  ;;  %782 = vmatprep.mubr.f32.mxu1 %v2044_v3 }
  0x47   : > { %1867 = vmatmul.mubr.msk.f32.vlgmr.msra.gmra.mrb[4].mxu0 %vm326_vm1, %v247_v21  ;;  %1871 = vmatprep.subr.msk.mxu0 %vm330_vm0, %v324_v32 }
  0x48   : > { %1870 = vmatmul.mubr.msk.f32.vlgmr.msra.gmra.mrb[4].mxu1 %vm326_vm1, %v247_v21  ;;  %1872 = vmatpush1.msk.msra.mxu0 %vm330_vm0, %v316_v29 }
  0x49   : > { %853 = vmatprep.mubr.f32.mxu0 %v2044_v3  ;;  %1874 = vmatprep.subr.msk.mxu1 %vm330_vm0, %v325_v33 }
  0x4a   : > { %1875 = vmatpush1.msk.msra.mxu1 %vm330_vm0, %v323_v31  ;;  %924 = vmatprep.mubr.f32.mxu1 %v2044_v3 }
  0x4b   : > { %1873 = vmatmul.mubr.msk.f32.vlgmr.msra.gmra.mrb[6].mxu0 %vm326_vm1, %v247_v21 }
  0x4c   : > { %1052 = vmatprep.mubr.f32.mxu0 %v2044_v3  ;;  %1876 = vmatmul.mubr.msk.f32.vlgmr.msra.gmra.mrb[6].mxu1 %vm326_vm1, %v247_v21 }
  0x4d   : > { %1129 = vmatprep.mubr.f32.mxu1 %v2044_v3 }
  0xb4   : > { %v2213_v34 = vpop.permute.xlu0 %251 }
 0x112   : > { %v429_v35 = vpop.f32.mrb[0].mxu0 }
 0x113   : > { %v430_v36 = vadd.f32 %v429_v35, %v2213_v34  ;;  %v431_v37 = vpop.f32.mrb[1].mxu0  ;;  %v500_v39 = vpop.f32.mrb[0].mxu1 }
 0x114   : > { %v432_v38 = vadd.f32 %v431_v37, %v2213_v34  ;;  %v501_v41 = vadd.f32 %v500_v39, %v2213_v34  ;;  %v502_v42 = vpop.f32.mrb[1].mxu1 }
 0x115   : > { %v947_v40 = vmul.f32 0.2, %v430_v36  ;;  %vm931_vm2 = vcmp.gt.f32.partialorder %v430_v36, 0.0  ;;  %v503_v44 = vadd.f32 %v502_v42, %v2213_v34 }
 0x116   : > { %v948_v43 = vmul.f32 0.2, %v432_v38  ;;  %v571_v45 = vpop.f32.mrb[2].mxu0  ;;  %vm932_vm3 = vcmp.gt.f32.partialorder %v432_v38, 0.0  ;;  %vm933_vm4 = vcmp.gt.f32.partialorder %v501_v41, 0.0 }
 0x117   : > { %v949_v46 = vmul.f32 0.2, %v501_v41  ;;  %v572_v47 = vadd.f32 %v571_v45, %v2213_v34  ;;  %v573_v48 = vpop.f32.mrb[3].mxu0  ;;  %v950_v49 = vmul.f32 0.2, %v503_v44  ;;  %v642_v51 = vpop.f32.mrb[2].mxu1  ;;  %v963_v57 = vsel %vm931_vm2, %v430_v36, %v947_v40 }
 0x118   : > { %v574_v50 = vadd.f32 %v573_v48, %v2213_v34  ;;  %v964_v52 = vsel %vm932_vm3, %v432_v38, %v948_v43  ;;  %vm934_vm6 = vcmp.gt.f32.partialorder %v503_v44, 0.0  ;;  %v643_v55 = vadd.f32 %v642_v51, %v2213_v34  ;;  %v644_v56 = vpop.f32.mrb[3].mxu1 }
 0x119   : > { %vm935_vm7 = vcmp.gt.f32.partialorder %v572_v47, 0.0  ;;  %v951_v54 = vmul.f32 0.2, %v572_v47  ;;  %988 = vmatprep.subr.mxu0 %v964_v52  ;;  %v645_v59 = vadd.f32 %v644_v56, %v2213_v34  ;;  %v966_v61 = vsel %vm934_vm6, %v503_v44, %v950_v49 }
 0x11a   : > { %v952_v58 = vmul.f32 0.2, %v574_v50  ;;  %v713_v60 = vpop.f32.mrb[4].mxu0  ;;  %989 = vmatpush1.msra.mxu0 %v963_v57  ;;  %vm936_vm8 = vcmp.gt.f32.partialorder %v574_v50, 0.0  ;;  %vm937_vm9 = vcmp.gt.f32.partialorder %v643_v55, 0.0  ;;  %1065 = vmatprep.subr.mxu1 %v966_v61  ;;  %v965_v1 = vsel %vm933_vm4, %v501_v41, %v949_v46 }
 0x11b   : > { %v953_v62 = vmul.f32 0.2, %v643_v55  ;;  %v714_v63 = vadd.f32 %v713_v60, %v2213_v34  ;;  %v715_v0 = vpop.f32.mrb[5].mxu0  ;;  %1877 = vmatmul.mubr.msk.f32.vlgmr.msra.gmra.mrb[8].mxu0 %vm981_vm5, %v2224_v53  ;;  %v954_v2 = vmul.f32 0.2, %v645_v59  ;;  %v784_v5 = vpop.f32.mrb[4].mxu1  ;;  %1066 = vmatpush1.msra.mxu1 %v965_v1  ;;  %v967_v10 = vsel %vm935_vm7, %v572_v47, %v951_v54 }
 0x11c   : > { %v716_v4 = vadd.f32 %v715_v0, %v2213_v34  ;;  %v968_v6 = vsel %vm936_vm8, %v574_v50, %v952_v58  ;;  %1058 = vmatprep.mubr.f32.mxu0 %v2044_v3  ;;  %vm938_vm10 = vcmp.gt.f32.partialorder %v645_v59, 0.0  ;;  %v785_v8 = vadd.f32 %v784_v5, %v2213_v34  ;;  %v786_v9 = vpop.f32.mrb[5].mxu1  ;;  %1879 = vmatmul.mubr.msk.f32.vlgmr.msra.gmra.mrb[8].mxu1 %vm981_vm5, %v2224_v53 }
 0x11d   : > { %1142 = vmatprep.subr.mxu0 %v968_v6  ;;  %v787_v12 = vadd.f32 %v786_v9, %v2213_v34  ;;  %v970_v14 = vsel %vm938_vm10, %v645_v59, %v954_v2  ;;  %1135 = vmatprep.mubr.f32.mxu1 %v2044_v3  ;;  %vm939_vm12 = vcmp.gt.f32.partialorder %v714_v63, 0.0  ;;  %v955_v15 = vmul.f32 0.2, %v714_v63 }
 0x11e   : > { %v956_v11 = vmul.f32 0.2, %v716_v4  ;;  %v855_v13 = vpop.f32.mrb[6].mxu0  ;;  %1143 = vmatpush1.msra.mxu0 %v967_v10  ;;  %vm940_vm11 = vcmp.gt.f32.partialorder %v716_v4, 0.0  ;;  %1219 = vmatprep.subr.mxu1 %v970_v14  ;;  %v969_v17 = vsel %vm937_vm9, %v643_v55, %v953_v62  ;;  %vm941_vm14 = vcmp.gt.f32.partialorder %v785_v8, 0.0 }
 0x11f   : > { %v857_v16 = vpop.f32.mrb[7].mxu0  ;;  %1878 = vmatmul.mubr.msk.f32.gmra.mrb[10].mxu0 %vm981_vm5, %v2238_v7  ;;  %v958_v18 = vmul.f32 0.2, %v787_v12  ;;  %v926_v20 = vpop.f32.mrb[6].mxu1  ;;  %1220 = vmatpush1.msra.mxu1 %v969_v17  ;;  %vm942_vm13 = vcmp.gt.f32.partialorder %v787_v12, 0.0  ;;  %v856_v27 = vadd.f32 %v855_v13, %v2213_v34  ;;  %v971_v28 = vsel %vm939_vm12, %v714_v63, %v955_v15 }
 0x120   : > { %v858_v19 = vadd.f32 %v857_v16, %v2213_v34  ;;  %v972_v21 = vsel %vm940_vm11, %v716_v4, %v956_v11  ;;  %1206 = vmatprep.mubr.f32.mxu0 %v2044_v3  ;;  %v957_v22 = vmul.f32 0.2, %v785_v8  ;;  %v928_v23 = vpop.f32.mrb[7].mxu1  ;;  %1880 = vmatmul.mubr.msk.f32.gmra.mrb[10].mxu1 %vm981_vm5, %v2238_v7  ;;  %v927_v31 = vadd.f32 %v926_v20, %v2213_v34 }
 0x121   : > { %1296 = vmatprep.subr.mxu0 %v972_v21  ;;  %v929_v25 = vadd.f32 %v928_v23, %v2213_v34  ;;  %v974_v26 = vsel %vm942_vm13, %v787_v12, %v958_v18  ;;  %1283 = vmatprep.mubr.f32.mxu1 %v2044_v3  ;;  %v959_v35 = vmul.f32 0.2, %v856_v27  ;;  %vm943_vm1 = vcmp.gt.f32.partialorder %v856_v27, 0.0 }
 0x122   : > { %v960_v24 = vmul.f32 0.2, %v858_v19  ;;  %vm944_vm15 = vcmp.gt.f32.partialorder %v858_v19, 0.0  ;;  %1373 = vmatprep.subr.mxu1 %v974_v26  ;;  %v973_v32 = vsel %vm941_vm14, %v785_v8, %v957_v22  ;;  %v961_v36 = vmul.f32 0.2, %v927_v31 }
 0x123   : > { %1881 = vmatmul.mubr.msk.f32.vlgmr.msra.gmra.mrb[12].mxu0 %vm981_vm5, %v2224_v53  ;;  %v962_v29 = vmul.f32 0.2, %v929_v25  ;;  %vm946_vm0 = vcmp.gt.f32.partialorder %v929_v25, 0.0  ;;  %vm945_vm2 = vcmp.gt.f32.partialorder %v927_v31, 0.0  ;;  %v975_v34 = vsel %vm943_vm1, %v856_v27, %v959_v35 }
 0x124   : > { %1297 = vmatpush1.msra.mxu0 %v971_v28  ;;  %v976_v30 = vsel %vm944_vm15, %v858_v19, %v960_v24  ;;  %1212 = vmatprep.mubr.f32.mxu0 %v2044_v3  ;;  %v977_v37 = vsel %vm945_vm2, %v927_v31, %v961_v36  ;;  %vm1738_vm3 = vcmask 7168   ;;  %vm1741_vm4 = vcmask 15368  }
 0x125   : > { %1883 = vmatmul.mubr.msk.f32.vlgmr.msra.gmra.mrb[12].mxu1 %vm981_vm5, %v2224_v53  ;;  %1450 = vmatprep.subr.mxu0 %v976_v30  ;;  %v978_v33 = vsel %vm946_vm0, %v929_v25, %v962_v29 }
 0x126   : > { %1374 = vmatpush1.msra.mxu1 %v973_v32  ;;  %1289 = vmatprep.mubr.f32.mxu1 %v2044_v3 }
 0x127   : > { %1882 = vmatmul.mubr.msk.f32.gmra.mrb[14].mxu0 %vm981_vm5, %v2238_v7  ;;  %1527 = vmatprep.subr.mxu1 %v978_v33 }
 0x128   : > { %1360 = vmatprep.mubr.f32.mxu0 %v2044_v3 }
 0x129   : > { %1884 = vmatmul.mubr.msk.f32.gmra.mrb[14].mxu1 %vm981_vm5, %v2238_v7 }
 0x12a   : > { %1437 = vmatprep.mubr.f32.mxu1 %v2044_v3 }
 0x12b   : > { %1885 = vmatmul.mubr.msk.f32.vlgmr.msra.gmra.mrb[16].mxu0 %vm981_vm5, %v2224_v53 }
 0x12c   : > { %1451 = vmatpush1.msra.mxu0 %v975_v34  ;;  %1366 = vmatprep.mubr.f32.mxu0 %v2044_v3 }
 0x12d   : > { %1887 = vmatmul.mubr.msk.f32.vlgmr.msra.gmra.mrb[16].mxu1 %vm981_vm5, %v2224_v53 }
 0x12e   : > { %1528 = vmatpush1.msra.mxu1 %v977_v37  ;;  %1443 = vmatprep.mubr.f32.mxu1 %v2044_v3 }
 0x12f   : > { %1886 = vmatmul.mubr.msk.f32.gmra.mrb[18].mxu0 %vm981_vm5, %v2238_v7 }
 0x130   : > { %1514 = vmatprep.mubr.f32.mxu0 %v2044_v3 }
 0x131   : > { %1888 = vmatmul.mubr.msk.f32.gmra.mrb[18].mxu1 %vm981_vm5, %v2238_v7 }
 0x132   : > { %1591 = vmatprep.mubr.f32.mxu1 %v2044_v3 }
 0x133   : > { %1889 = vmatmul.mubr.msk.f32.vlgmr.msra.gmra.mrb[20].mxu0 %vm981_vm5, %v2224_v53 }
 0x134   : > { %1520 = vmatprep.mubr.f32.mxu0 %v2044_v3 }
 0x135   : > { %1891 = vmatmul.mubr.msk.f32.vlgmr.msra.gmra.mrb[20].mxu1 %vm981_vm5, %v2224_v53 }
 0x136   : > { %1597 = vmatprep.mubr.f32.mxu1 %v2044_v3 }
 0x137   : > { %1890 = vmatmul.mubr.msk.f32.gmra.mrb[22].mxu0 %vm981_vm5, %v2238_v7 }
 0x139   : > { %1892 = vmatmul.mubr.msk.f32.gmra.mrb[22].mxu1 %vm981_vm5, %v2238_v7 }
 0x1ee   : > { %v2293_v38 = vpop.f32.mrb[8].mxu0 }
 0x1ef   : > { %v2295_v39 = vpop.f32.mrb[9].mxu0  ;;  %v2299_v41 = vpop.f32.mrb[8].mxu1 }
 0x1f0   : > { %v1604_v40 = vadd.f32 %v2295_v39, %v2293_v38  ;;  %v2301_v42 = vpop.f32.mrb[9].mxu1 }
 0x1f2   : > { %v1605_v43 = vadd.f32 %v1604_v40, %v2299_v41  ;;  %v2304_v3 = vpop.f32.mrb[10].mxu0 }
 0x1f3   : > { %v2306_v44 = vpop.f32.mrb[11].mxu0  ;;  %v2311_v47 = vpop.f32.mrb[10].mxu1 }
 0x1f4   : > { %v1621_v45 = vadd.f32 %v2306_v44, %v2304_v3  ;;  %v1606_v46 = vadd.f32 %v1605_v43, %v2301_v42  ;;  %v2313_v48 = vpop.f32.mrb[11].mxu1 }
 0x1f6   : > { %v1622_v49 = vadd.f32 %v1621_v45, %v2311_v47  ;;  %v2316_v50 = vpop.f32.mrb[12].mxu0 }
 0x1f7   : > { %v1607_v51 = vadd.f32 %v1606_v46, %v2316_v50  ;;  %v2319_v52 = vpop.f32.mrb[13].mxu0 }
 0x1f8   : > { %v1623_v53 = vadd.f32 %v1622_v49, %v2313_v48  ;;  %v2322_v54 = vpop.f32.mrb[12].mxu1 }
 0x1f9   : > { %v1608_v55 = vadd.f32 %v1607_v51, %v2319_v52  ;;  %v2325_v56 = vpop.f32.mrb[13].mxu1 }
 0x1fa   : > { %v2327_v57 = vpop.f32.mrb[14].mxu0 }
 0x1fb   : > { %v1624_v58 = vadd.f32 %v1623_v53, %v2327_v57  ;;  %v1609_v59 = vadd.f32 %v1608_v55, %v2322_v54  ;;  %v2331_v60 = vpop.f32.mrb[15].mxu0 }
 0x1fc   : > { %v2333_v61 = vpop.f32.mrb[14].mxu1 }
 0x1fd   : > { %v1625_v62 = vadd.f32 %v1624_v58, %v2331_v60  ;;  %v1610_v63 = vadd.f32 %v1609_v59, %v2325_v56  ;;  %v2337_v0 = vpop.f32.mrb[15].mxu1 }
 0x1fe   : > { %v2339_v1 = vpop.f32.mrb[16].mxu0 }
 0x1ff   : > { %v1626_v2 = vadd.f32 %v1625_v62, %v2333_v61  ;;  %v1611_v4 = vadd.f32 %v1610_v63, %v2339_v1  ;;  %v2343_v5 = vpop.f32.mrb[17].mxu0 }
 0x200   : > { %v2345_v6 = vpop.f32.mrb[16].mxu1 }
 0x201   : > { %v1627_v7 = vadd.f32 %v1626_v2, %v2337_v0  ;;  %v1612_v8 = vadd.f32 %v1611_v4, %v2343_v5  ;;  %v2349_v9 = vpop.f32.mrb[17].mxu1 }
 0x202   : > { %v2351_v10 = vpop.f32.mrb[18].mxu0 }
 0x203   : > { %v1628_v11 = vadd.f32 %v1627_v7, %v2351_v10  ;;  %v1613_v12 = vadd.f32 %v1612_v8, %v2345_v6  ;;  %v2355_v13 = vpop.f32.mrb[19].mxu0 }
 0x204   : > { %v2357_v14 = vpop.f32.mrb[18].mxu1 }
 0x205   : > { %v1629_v15 = vadd.f32 %v1628_v11, %v2355_v13  ;;  %v1614_v16 = vadd.f32 %v1613_v12, %v2349_v9  ;;  %v2361_v17 = vpop.f32.mrb[19].mxu1 }
 0x206   : > { %v2363_v18 = vpop.f32.mrb[20].mxu0 }
 0x207   : > { %v1630_v19 = vadd.f32 %v1629_v15, %v2357_v14  ;;  %v1615_v20 = vadd.f32 %v1614_v16, %v2363_v18  ;;  %v2367_v21 = vpop.f32.mrb[21].mxu0 }
 0x208   : > { %v2369_v22 = vpop.f32.mrb[20].mxu1 }
 0x209   : > { %v1631_v23 = vadd.f32 %v1630_v19, %v2361_v17  ;;  %v1616_v24 = vadd.f32 %v1615_v20, %v2367_v21  ;;  %v2373_v25 = vpop.f32.mrb[21].mxu1 }
 0x20a   : > { %v2375_v26 = vpop.f32.mrb[22].mxu0 }
 0x20b   : > { %v1632_v27 = vadd.f32 %v1631_v23, %v2375_v26  ;;  %v1617_v28 = vadd.f32 %v1616_v24, %v2369_v22  ;;  %v2379_v29 = vpop.f32.mrb[23].mxu0 }
 0x20c   : > { %v2381_v30 = vpop.f32.mrb[22].mxu1 }
 0x20d   : > { %v1633_v31 = vadd.f32 %v1632_v27, %v2379_v29  ;;  %v1618_v32 = vadd.f32 %v1617_v28, %v2373_v25  ;;  %v2385_v33 = vpop.f32.mrb[23].mxu1 }
 0x20f   : > { %v1634_v35 = vadd.f32 %v1633_v31, %v2381_v30  ;;  %1619 = vadd.xlane.f32.xlu0 %v1618_v32 }
 0x211   : > { %v1635_v36 = vadd.f32 %v1634_v35, %v2385_v33 }
 0x213   : > { %1636 = vadd.xlane.f32.xlu1 %v1635_v36 }
 0x29c   : > { %v1620_v34 = vpop.xlane.xlu0 %1619 }
 0x29d   : > { %v2396_v37 = vmul.f32 0.00048828125, %v1620_v34  ;;  %1739 = vst.msk [vmem:[%s2394_s24] sm:$0xff] %vm1738_vm3, %v1620_v34 }
 0x29f   : > { %v1640_v40 = vsub.f32 %v2293_v38, %v2396_v37  ;;  %v1641_v43 = vsub.f32 %v2295_v39, %v2396_v37  ;;  %v1642_v46 = vsub.f32 %v2299_v41, %v2396_v37  ;;  %v1643_v55 = vsub.f32 %v2301_v42, %v2396_v37 }
 0x2a0   : > { %v1637_v45 = vpop.xlane.xlu1 %1636  ;;  %v1644_v58 = vsub.f32 %v2316_v50, %v2396_v37  ;;  %v1645_v41 = vsub.f32 %v2319_v52, %v2396_v37  ;;  %v1646_v4 = vsub.f32 %v2322_v54, %v2396_v37  ;;  %v1648_v15 = vsub.f32 %v2339_v1, %v2396_v37 }
 0x2a1   : > { %1740 = vst.msk [vmem:[%s2394_s24 + $0x8] sm:$0xff] %vm1738_vm3, %v1637_v45  ;;  %v1672_v49 = vmul.f32 %v1640_v40, %v1640_v40  ;;  %v1673_v51 = vmul.f32 %v1641_v43, %v1641_v43  ;;  %v2406_v53 = vmul.f32 0.00048828125, %v1637_v45  ;;  %v1674_v59 = vmul.f32 %v1642_v46, %v1642_v46 }
 0x2a2   : > { %v1675_v63 = vmul.f32 %v1643_v55, %v1643_v55  ;;  %v1676_v42 = vmul.f32 %v1644_v58, %v1644_v58  ;;  %v1677_v12 = vmul.f32 %v1645_v41, %v1645_v41  ;;  %v1678_v16 = vmul.f32 %v1646_v4, %v1646_v4 }
 0x2a3   : > { %v1704_v38 = vadd.f32 %v1673_v51, %v1672_v49  ;;  %v1656_v39 = vsub.f32 %v2304_v3, %v2406_v53  ;;  %v1657_v62 = vsub.f32 %v2306_v44, %v2406_v53  ;;  %v1658_v50 = vsub.f32 %v2311_v47, %v2406_v53 }
 0x2a4   : > { %v1647_v3 = vsub.f32 %v2325_v56, %v2396_v37  ;;  %v1659_v52 = vsub.f32 %v2313_v48, %v2406_v53  ;;  %v1660_v19 = vsub.f32 %v2327_v57, %v2406_v53  ;;  %v1649_v23 = vsub.f32 %v2343_v5, %v2396_v37 }
 0x2a5   : > { %v1705_v2 = vadd.f32 %v1704_v38, %v1674_v59  ;;  %v1688_v8 = vmul.f32 %v1656_v39, %v1656_v39  ;;  %v1689_v11 = vmul.f32 %v1657_v62, %v1657_v62  ;;  %v1690_v20 = vmul.f32 %v1658_v50, %v1658_v50 }
 0x2a6   : > { %v1679_v24 = vmul.f32 %v1647_v3, %v1647_v3  ;;  %v1661_v27 = vsub.f32 %v2331_v60, %v2406_v53  ;;  %v1691_v28 = vmul.f32 %v1659_v52, %v1659_v52  ;;  %v1650_v1 = vsub.f32 %v2345_v6, %v2396_v37 }
 0x2a7   : > { %v1706_v7 = vadd.f32 %v1705_v2, %v1675_v63  ;;  %v1721_v47 = vadd.f32 %v1689_v11, %v1688_v8  ;;  %v1680_v31 = vmul.f32 %v1648_v15, %v1648_v15  ;;  %v1662_v57 = vsub.f32 %v2333_v61, %v2406_v53 }
 0x2a8   : > { %v1692_v35 = vmul.f32 %v1660_v19, %v1660_v19  ;;  %v1651_v5 = vsub.f32 %v2349_v9, %v2396_v37  ;;  %v1681_v34 = vmul.f32 %v1649_v23, %v1649_v23  ;;  %v1663_v60 = vsub.f32 %v2337_v0, %v2406_v53 }
 0x2a9   : > { %v1707_v44 = vadd.f32 %v1706_v7, %v1676_v42  ;;  %v1722_v48 = vadd.f32 %v1721_v47, %v1690_v20  ;;  %v1693_v43 = vmul.f32 %v1661_v27, %v1661_v27  ;;  %v1652_v6 = vsub.f32 %v2363_v18, %v2396_v37 }
 0x2aa   : > { %v1682_v46 = vmul.f32 %v1650_v1, %v1650_v1  ;;  %v1664_v61 = vsub.f32 %v2351_v10, %v2406_v53  ;;  %v1694_v51 = vmul.f32 %v1662_v57, %v1662_v57  ;;  %v1653_v9 = vsub.f32 %v2367_v21, %v2396_v37 }
 0x2ab   : > { %v1708_v54 = vadd.f32 %v1707_v44, %v1677_v12  ;;  %v1723_v36 = vadd.f32 %v1722_v48, %v1691_v28  ;;  %v1683_v58 = vmul.f32 %v1651_v5, %v1651_v5  ;;  %v1665_v0 = vsub.f32 %v2355_v13, %v2406_v53 }
 0x2ac   : > { %v1695_v38 = vmul.f32 %v1663_v60, %v1663_v60  ;;  %v1654_v18 = vsub.f32 %v2369_v22, %v2396_v37  ;;  %v1684_v62 = vmul.f32 %v1652_v6, %v1652_v6  ;;  %v1666_v10 = vsub.f32 %v2357_v14, %v2406_v53 }
 0x2ad   : > { %v1709_v56 = vadd.f32 %v1708_v54, %v1678_v16  ;;  %v1724_v45 = vadd.f32 %v1723_v36, %v1692_v35  ;;  %v1696_v63 = vmul.f32 %v1664_v61, %v1664_v61  ;;  %v1655_v21 = vsub.f32 %v2373_v25, %v2396_v37 }
 0x2ae   : > { %v1685_v4 = vmul.f32 %v1653_v9, %v1653_v9  ;;  %v1667_v13 = vsub.f32 %v2361_v17, %v2406_v53  ;;  %v1697_v7 = vmul.f32 %v1665_v0, %v1665_v0  ;;  %v1686_v8 = vmul.f32 %v1654_v18, %v1654_v18 }
 0x2af   : > { %v1710_v32 = vadd.f32 %v1709_v56, %v1679_v24  ;;  %v1725_v55 = vadd.f32 %v1724_v45, %v1693_v43  ;;  %v1668_v22 = vsub.f32 %v2375_v26, %v2406_v53  ;;  %v1698_v3 = vmul.f32 %v1666_v10, %v1666_v10 }
 0x2b0   : > { %v1687_v14 = vmul.f32 %v1655_v21, %v1655_v21  ;;  %v1669_v52 = vsub.f32 %v2379_v29, %v2406_v53  ;;  %v1699_v25 = vmul.f32 %v1667_v13, %v1667_v13  ;;  %v1670_v17 = vsub.f32 %v2381_v30, %v2406_v53 }
 0x2b1   : > { %v1711_v40 = vadd.f32 %v1710_v32, %v1680_v31  ;;  %v1726_v39 = vadd.f32 %v1725_v55, %v1694_v51  ;;  %v1700_v16 = vmul.f32 %v1668_v22, %v1668_v22  ;;  %v1671_v26 = vsub.f32 %v2385_v33, %v2406_v53 }
 0x2b2   : > { %v1701_v19 = vmul.f32 %v1669_v52, %v1669_v52  ;;  %v1702_v47 = vmul.f32 %v1670_v17, %v1670_v17 }
 0x2b3   : > { %v1712_v49 = vadd.f32 %v1711_v40, %v1681_v34  ;;  %v1727_v2 = vadd.f32 %v1726_v39, %v1695_v38  ;;  %v1703_v24 = vmul.f32 %v1671_v26, %v1671_v26 }
 0x2b5   : > { %v1713_v59 = vadd.f32 %v1712_v49, %v1682_v46  ;;  %v1728_v50 = vadd.f32 %v1727_v2, %v1696_v63 }
 0x2b7   : > { %v1714_v41 = vadd.f32 %v1713_v59, %v1683_v58  ;;  %v1729_v12 = vadd.f32 %v1728_v50, %v1697_v7 }
 0x2b9   : > { %v1715_v42 = vadd.f32 %v1714_v41, %v1684_v62  ;;  %v1730_v37 = vadd.f32 %v1729_v12, %v1698_v3 }
 0x2bb   : > { %v1716_v11 = vadd.f32 %v1715_v42, %v1685_v4  ;;  %v1731_v54 = vadd.f32 %v1730_v37, %v1699_v25 }
 0x2bd   : > { %v1717_v44 = vadd.f32 %v1716_v11, %v1686_v8  ;;  %v1732_v20 = vadd.f32 %v1731_v54, %v1700_v16 }
 0x2bf   : > { %v1718_v15 = vadd.f32 %v1717_v44, %v1687_v14  ;;  %v1733_v23 = vadd.f32 %v1732_v20, %v1701_v19 }
 0x2c1   : > { %1719 = vadd.xlane.f32.xlu1 %v1718_v15  ;;  %v1734_v29 = vadd.f32 %v1733_v23, %v1702_v47 }
 0x2c3   : > { %v1735_v56 = vadd.f32 %v1734_v29, %v1703_v24 }
 0x2c5   : > { %1736 = vadd.xlane.f32.xlu1 %v1735_v56 }
 0x34e   : > { %v1720_v27 = vpop.xlane.xlu1 %1719 }
 0x34f   : > { %1742 = vst.msk [vmem:[%s2394_s24] sm:$0xff] %vm1741_vm4, %v1720_v27 }
 0x352   : > { %v1737_v28 = vpop.xlane.xlu1 %1736 }
 0x353   : > { %1743 = vst.msk [vmem:[%s2394_s24 + $0x8] sm:$0xff] %vm1741_vm4, %v1737_v28 }
 0x354 PF: > { %s17_s20 = sadd.s32 1, %s2040_s20   ;;  %s2496_s15 = smov %s2024_s16 }
 0x355   : > { %p14_p9 = scmp.ge.s32.totalorder %s17_s20, 4   ;;  %s2497_s16 = smov %s2028_s17 }
 0x356   : > { %s2498_s17 = smov %s2120_s27  ;;  %s2499_s18 = smov %s2036_s19 }
 0x357   : > { %s2500_s19 = smov %s2502_s22  ;;  %16 = sbr.rel (!%p14_p9) target bundleno = 4 (0x4), region = 76 }
 0x35e   :  { %1773 = vsyncpa [#allocation3], 1 }
 0x35f   :  { %1775 = vsyncpa [#allocation3 + $0x1], 1 }

</bundles_post_ra>
